<compile_context>
chip_gen: v5e
topology: v5e:2x2
jax: 0.10.0
libtpu: 0.0.40
codegen_flags: <defaults>
</compile_context>

<pallas_src>
import functools

import jax
import jax.numpy as jnp
from jax.experimental import pallas as pl
from jax.experimental.pallas import tpu as pltpu

D_IN = 512
D_H = 256
D_OUT = 101        # 101 classes
D_OUT_PAD = 128    # pad classifier head to a full lane width (unmasked vst)

_VMEM_LIMIT_BYTES = 48 * 1024 * 1024  # > v5e's 16 MiB scoped default, < v7x's 64 MiB physical


# ----------------------------------------------------------------------------- params

def _xavier_uniform(key, fan_in, fan_out, dtype=jnp.float32):
    # Matches torch.nn.init.xavier_uniform_ (gain=1): U(-a, a), a = sqrt(6/(fan_in+fan_out)).
    bound = (6.0 / (fan_in + fan_out)) ** 0.5
    # PyTorch weight shape is (out, in); we store the transpose (in, out) for x @ W.
    return jax.random.uniform(key, (fan_in, fan_out), dtype=dtype,
                              minval=-bound, maxval=bound)


def init_params(key):
    """f32 master weights, PyTorch-equivalent init (xavier_uniform weights, zero biases)."""
    k1, k2, k3 = jax.random.split(key, 3)
    return {
        "w1": _xavier_uniform(k1, D_IN, D_H),
        "b1": jnp.zeros((1, D_H), jnp.float32),
        "w2": _xavier_uniform(k2, D_H, D_H),
        "b2": jnp.zeros((1, D_H), jnp.float32),
        "w3": _xavier_uniform(k3, D_H, D_OUT),
        "b3": jnp.zeros((1, D_OUT), jnp.float32),
    }


def prepare_params(params):
    """One-time (per checkpoint) weight prep, hoisted out of the per-call path:
    bf16 weights for the MXU + zero-pad of the 101-wide head to 128 output lanes."""
    pad = ((0, 0), (0, D_OUT_PAD - D_OUT))
    return {
        "w1": params["w1"].astype(jnp.bfloat16),
        "b1": params["b1"].astype(jnp.float32).reshape(1, D_H),
        "w2": params["w2"].astype(jnp.bfloat16),
        "b2": params["b2"].astype(jnp.float32).reshape(1, D_H),
        "w3": jnp.pad(params["w3"].astype(jnp.bfloat16), pad),
        "b3": jnp.pad(params["b3"].astype(jnp.float32).reshape(1, D_OUT), pad),
    }


# ----------------------------------------------------------------------------- kernel

def _mlp_kernel(x_ref, w1_ref, b1_ref, w2_ref, b2_ref, w3_ref, b3_ref, o_ref):
    # x arrives in its source dtype (f32 or bf16); cast to bf16 in-VMEM so every
    # matmul runs at bf16 MXU rate with f32 accumulation. Bias-add / ReLU / casts
    # are VPU filler under the MXU/DMA slack — not worth micro-optimizing.
    x = x_ref[...].astype(jnp.bfloat16)

    h1 = jnp.dot(x, w1_ref[...], preferred_element_type=jnp.float32) + b1_ref[...]
    h1 = jnp.maximum(h1, 0.0).astype(jnp.bfloat16)

    h2 = jnp.dot(h1, w2_ref[...], preferred_element_type=jnp.float32) + b2_ref[...]
    h2 = jnp.maximum(h2, 0.0).astype(jnp.bfloat16)

    out = jnp.dot(h2, w3_ref[...], preferred_element_type=jnp.float32) + b3_ref[...]
    o_ref[...] = out.astype(o_ref.dtype)   # bf16 writeback: halves the output HBM stream


# ----------------------------------------------------------------------------- tiling

@functools.lru_cache(maxsize=1)
def _tpu_defaults():
    """Generation-aware defaults: batch tile target + TensorCores per chip."""
    kind = ""
    try:
        kind = jax.devices()[0].device_kind.lower()
    except Exception:  # pragma: no cover - be robust off-TPU / in interpret mode
        pass
    if "7" in kind:                      # v7x: 2 TCs, ~3.2 TB/s HBM, 64 MiB VMEM
        return {"block_b": 4096, "num_cores": 2}
    if "v6" in kind:                     # v6e: 1 TC, ~1.4 TB/s HBM
        return {"block_b": 2048, "num_cores": 1}
    if "v5" in kind:                     # v5e: 1 TC, roughly MXU-bound here
        return {"block_b": 1024, "num_cores": 1}
    return {"block_b": 1024, "num_cores": 1}


def _choose_batch_tile(B, block_b, num_cores):
    """Batch tile: multiple of 16 sublanes (bf16 native tile), big enough to hide
    the ~0.35 us per-step overhead; split into >= num_cores grid steps only on
    multi-TC chips (v7x). Single-TC chips take one exact-fit step when it fits."""
    if B <= 16:
        return B                                   # full array dim -> always legal
    r16 = lambda n: -(-n // 16) * 16
    if num_cores > 1:
        return min(block_b, r16(pl.cdiv(B, num_cores)))
    return B if B <= block_b else block_b


# ----------------------------------------------------------------------------- wrapper

@functools.partial(jax.jit, static_argnames=("block_b", "num_cores", "return_padded"))
def _forward(x, params, *, block_b, num_cores, return_padded):
    B, d_in = x.shape
    assert d_in == D_IN

    # Accept raw (unprepared) params too, but the hoisted prepare_params() path is
    # preferred: it avoids re-casting/padding ~450 KB of weights on every call.
    if params["w3"].shape[1] != D_OUT_PAD:
        params = prepare_params(params)

    w1, b1 = params["w1"], params["b1"]
    w2, b2 = params["w2"], params["b2"]
    w3, b3 = params["w3"], params["b3"]

    tb = _choose_batch_tile(B, block_b, num_cores)
    grid = (pl.cdiv(B, tb),)  # partial last block is clipped by Pallas; no jnp.pad copy of x

    # Weights/biases are tiny (<1 MiB total): keep the full arrays resident in VMEM
    # every grid step (constant index_map -> DMA'd once).
    full = lambda shape: pl.BlockSpec(shape, lambda i: (0, 0))

    out = pl.pallas_call(
        _mlp_kernel,
        out_shape=jax.ShapeDtypeStruct((B, D_OUT_PAD), jnp.bfloat16),
        grid_spec=pltpu.PrefetchScalarGridSpec(
            num_scalar_prefetch=0,
            grid=grid,
            in_specs=[
                pl.BlockSpec((tb, D_IN), lambda i: (i, 0)),   # x tile (source dtype)
                full((D_IN, D_H)),                            # w1 (bf16)
                full((1, D_H)),                               # b1 (f32)
                full((D_H, D_H)),                             # w2 (bf16)
                full((1, D_H)),                               # b2 (f32)
                full((D_H, D_OUT_PAD)),                       # w3 (bf16, padded)
                full((1, D_OUT_PAD)),                         # b3 (f32, padded)
            ],
            out_specs=pl.BlockSpec((tb, D_OUT_PAD), lambda i: (i, 0)),
        ),
        compiler_params=pltpu.CompilerParams(
            dimension_semantics=("parallel",),
            vmem_limit_bytes=_VMEM_LIMIT_BYTES),
    )(x, w1, b1, w2, b2, w3, b3)

    if return_padded:
        # Lane-dense (B, 128) bf16 buffer; columns 101..127 are exact zeros.
        # Prefer this at loss/argmax sites to skip an extra HBM pass for the slice.
        return out
    return out[:, :D_OUT]


def clip_embedding_classifier(x, params, *, block_b=None, return_padded=False):
    """Forward pass of the 3-layer classifier.

    Args:
      x: (B, 512) CLIP embeddings (any float dtype; cast to bf16 inside the kernel).
      params: dict from init_params() (ideally pre-processed with prepare_params()).
      return_padded: if True, return the lane-dense (B, 128) bf16 buffer (cols
        101..127 are zeros) and skip the post-kernel [:, :101] slice pass.
    Returns:
      (B, 101) bf16 logits (or (B, 128) if return_padded). Upcast at the consumer
      if f32 logits are required; accuracy is already bf16-matmul limited.
    """
    defaults = _tpu_defaults()
    if block_b is None:
        block_b = defaults["block_b"]
    return _forward(x, params, block_b=block_b, num_cores=defaults["num_cores"],
                    return_padded=return_padded)


# ----------------------------------------------------------------------------- test

def _reference(x, params):
    x = x.astype(jnp.float32)
    h1 = jax.nn.relu(x @ params["w1"] + params["b1"])
    h2 = jax.nn.relu(h1 @ params["w2"] + params["b2"])
    return h2 @ params["w3"] + params["b3"]


if __name__ == "__main__":
    key = jax.random.PRNGKey(0)
    k_param, k_x = jax.random.split(key)

    raw_params = init_params(k_param)
    params = prepare_params(raw_params)   # one-time weight prep (hoisted out of the call)

    # B=8/13 exercise the exact-fit single-block path (incl. non-multiple-of-16);
    # (B=100, block_b=32) exercises a multi-step grid with a clipped partial block.
    cases = [(8, None), (13, None), (100, 32)]
    for B, block_b in cases:
        x = jax.random.normal(jax.random.fold_in(k_x, B), (B, D_IN), dtype=jnp.float32)

        logits = clip_embedding_classifier(x, params, block_b=block_b)
        logits = jax.block_until_ready(logits)

        assert logits.shape == (B, D_OUT), logits.shape
        assert logits.dtype == jnp.bfloat16, logits.dtype

        ref = _reference(x, raw_params)
        # bf16 matmul inputs + bf16 writeback vs. f32 reference -> loosened tolerance.
        diff = jnp.max(jnp.abs(logits.astype(jnp.float32) - ref))
        assert jnp.allclose(logits.astype(jnp.float32), ref, atol=1e-1, rtol=5e-2), float(diff)

        # Padded-output path: columns 101..127 must be exact zeros.
        padded = jax.block_until_ready(
            clip_embedding_classifier(x, params, block_b=block_b, return_padded=True))
        assert padded.shape == (B, D_OUT_PAD)
        assert jnp.all(padded[:, D_OUT:] == 0)

    print("KERNEL_OK")
</pallas_src>

<mosaic_0001>
module attributes {stable_mosaic.version = 11 : i64} {
  func.func @_mlp_kernel(%arg0: i32, %arg1: memref<8x512xf32, #tpu.memory_space<vmem>>, %arg2: memref<512x256xbf16, #tpu.memory_space<vmem>>, %arg3: memref<1x256xf32, #tpu.memory_space<vmem>>, %arg4: memref<256x256xbf16, #tpu.memory_space<vmem>>, %arg5: memref<1x256xf32, #tpu.memory_space<vmem>>, %arg6: memref<256x128xbf16, #tpu.memory_space<vmem>>, %arg7: memref<1x128xf32, #tpu.memory_space<vmem>>, %arg8: memref<8x128xbf16, #tpu.memory_space<vmem>>) attributes {dimension_semantics = [#tpu.dimension_semantics<parallel>], iteration_bounds = array<i64: 1>, scalar_prefetch = 0 : i64, scratch_operands = 0 : i64, tpu.core_type = #tpu.core_type<tc>, window_params = [{transform_indices = @transform_0, window_bounds = array<i64: 8, 512>}, {pipeline_mode = #tpu.pipeline_mode<synchronous>, transform_indices = @transform_1, window_bounds = array<i64: 512, 256>}, {pipeline_mode = #tpu.pipeline_mode<synchronous>, transform_indices = @transform_2, window_bounds = array<i64: 1, 256>}, {pipeline_mode = #tpu.pipeline_mode<synchronous>, transform_indices = @transform_3, window_bounds = array<i64: 256, 256>}, {pipeline_mode = #tpu.pipeline_mode<synchronous>, transform_indices = @transform_4, window_bounds = array<i64: 1, 256>}, {pipeline_mode = #tpu.pipeline_mode<synchronous>, transform_indices = @transform_5, window_bounds = array<i64: 256, 128>}, {pipeline_mode = #tpu.pipeline_mode<synchronous>, transform_indices = @transform_6, window_bounds = array<i64: 1, 128>}, {transform_indices = @transform_7, window_bounds = array<i64: 8, 128>}]} {
    %c0 = arith.constant 0 : index
    %c0_0 = arith.constant 0 : index
    %0 = vector.load %arg1[%c0, %c0_0] : memref<8x512xf32, #tpu.memory_space<vmem>>, vector<8x512xf32>
    %1 = arith.truncf %0 : vector<8x512xf32> to vector<8x512xbf16>
    %c0_1 = arith.constant 0 : index
    %c0_2 = arith.constant 0 : index
    %2 = vector.load %arg2[%c0_1, %c0_2] : memref<512x256xbf16, #tpu.memory_space<vmem>>, vector<512x256xbf16>
    %cst = arith.constant dense<0.000000e+00> : vector<8x256xf32>
    %3 = tpu.matmul %1, %2, %cst {dimension_numbers = #tpu.dot_dimension_numbers<[1], [0], [0], [1], [0, 0, 1, 1], [], []>} : vector<8x512xbf16>, vector<512x256xbf16>, vector<8x256xf32> -> vector<8x256xf32>
    %c0_3 = arith.constant 0 : index
    %c0_4 = arith.constant 0 : index
    %4 = vector.load %arg3[%c0_3, %c0_4] : memref<1x256xf32, #tpu.memory_space<vmem>>, vector<1x256xf32>
    %5 = vector.broadcast %4 : vector<1x256xf32> to vector<8x256xf32>
    %6 = arith.addf %3, %5 : vector<8x256xf32>
    %cst_5 = arith.constant 0.000000e+00 : f32
    %7 = vector.broadcast %cst_5 : f32 to vector<8x256xf32>
    %8 = arith.maximumf %6, %7 : vector<8x256xf32>
    %9 = arith.truncf %8 : vector<8x256xf32> to vector<8x256xbf16>
    %c0_6 = arith.constant 0 : index
    %c0_7 = arith.constant 0 : index
    %10 = vector.load %arg4[%c0_6, %c0_7] : memref<256x256xbf16, #tpu.memory_space<vmem>>, vector<256x256xbf16>
    %cst_8 = arith.constant dense<0.000000e+00> : vector<8x256xf32>
    %11 = tpu.matmul %9, %10, %cst_8 {dimension_numbers = #tpu.dot_dimension_numbers<[1], [0], [0], [1], [0, 0, 1, 1], [], []>} : vector<8x256xbf16>, vector<256x256xbf16>, vector<8x256xf32> -> vector<8x256xf32>
    %c0_9 = arith.constant 0 : index
    %c0_10 = arith.constant 0 : index
    %12 = vector.load %arg5[%c0_9, %c0_10] : memref<1x256xf32, #tpu.memory_space<vmem>>, vector<1x256xf32>
    %13 = vector.broadcast %12 : vector<1x256xf32> to vector<8x256xf32>
    %14 = arith.addf %11, %13 : vector<8x256xf32>
    %cst_11 = arith.constant 0.000000e+00 : f32
    %15 = vector.broadcast %cst_11 : f32 to vector<8x256xf32>
    %16 = arith.maximumf %14, %15 : vector<8x256xf32>
    %17 = arith.truncf %16 : vector<8x256xf32> to vector<8x256xbf16>
    %c0_12 = arith.constant 0 : index
    %c0_13 = arith.constant 0 : index
    %18 = vector.load %arg6[%c0_12, %c0_13] : memref<256x128xbf16, #tpu.memory_space<vmem>>, vector<256x128xbf16>
    %cst_14 = arith.constant dense<0.000000e+00> : vector<8x128xf32>
    %19 = tpu.matmul %17, %18, %cst_14 {dimension_numbers = #tpu.dot_dimension_numbers<[1], [0], [0], [1], [0, 0, 1, 1], [], []>} : vector<8x256xbf16>, vector<256x128xbf16>, vector<8x128xf32> -> vector<8x128xf32>
    %c0_15 = arith.constant 0 : index
    %c0_16 = arith.constant 0 : index
    %20 = vector.load %arg7[%c0_15, %c0_16] : memref<1x128xf32, #tpu.memory_space<vmem>>, vector<1x128xf32>
    %21 = vector.broadcast %20 : vector<1x128xf32> to vector<8x128xf32>
    %22 = arith.addf %19, %21 : vector<8x128xf32>
    %23 = arith.truncf %22 : vector<8x128xf32> to vector<8x128xbf16>
    %c0_17 = arith.constant 0 : index
    %c0_18 = arith.constant 0 : index
    %24 = vector.load %arg8[%c0_17, %c0_18] : memref<8x128xbf16, #tpu.memory_space<vmem>>, vector<8x128xbf16>
    tpu.vector_store %arg8[%c0_17, %c0_18], %23 {strides = array<i32>} : memref<8x128xbf16, #tpu.memory_space<vmem>>, vector<8x128xbf16>,
    return
  }
  func.func @transform_0(%arg0: i32) -> (i32, i32) {
    %c0_i32 = arith.constant 0 : i32
    %c0_i32_0 = arith.constant 0 : i32
    return %arg0, %c0_i32 : i32, i32
  }
  func.func @transform_1(%arg0: i32) -> (i32, i32) {
    %c0_i32 = arith.constant 0 : i32
    %c0_i32_0 = arith.constant 0 : i32
    %c0_i32_1 = arith.constant 0 : i32
    return %c0_i32, %c0_i32_0 : i32, i32
  }
  func.func @transform_2(%arg0: i32) -> (i32, i32) {
    %c0_i32 = arith.constant 0 : i32
    %c0_i32_0 = arith.constant 0 : i32
    %c0_i32_1 = arith.constant 0 : i32
    return %c0_i32, %c0_i32_0 : i32, i32
  }
  func.func @transform_3(%arg0: i32) -> (i32, i32) {
    %c0_i32 = arith.constant 0 : i32
    %c0_i32_0 = arith.constant 0 : i32
    %c0_i32_1 = arith.constant 0 : i32
    return %c0_i32, %c0_i32_0 : i32, i32
  }
  func.func @transform_4(%arg0: i32) -> (i32, i32) {
    %c0_i32 = arith.constant 0 : i32
    %c0_i32_0 = arith.constant 0 : i32
    %c0_i32_1 = arith.constant 0 : i32
    return %c0_i32, %c0_i32_0 : i32, i32
  }
  func.func @transform_5(%arg0: i32) -> (i32, i32) {
    %c0_i32 = arith.constant 0 : i32
    %c0_i32_0 = arith.constant 0 : i32
    %c0_i32_1 = arith.constant 0 : i32
    return %c0_i32, %c0_i32_0 : i32, i32
  }
  func.func @transform_6(%arg0: i32) -> (i32, i32) {
    %c0_i32 = arith.constant 0 : i32
    %c0_i32_0 = arith.constant 0 : i32
    %c0_i32_1 = arith.constant 0 : i32
    return %c0_i32, %c0_i32_0 : i32, i32
  }
  func.func @transform_7(%arg0: i32) -> (i32, i32) {
    %c0_i32 = arith.constant 0 : i32
    %c0_i32_0 = arith.constant 0 : i32
    return %arg0, %c0_i32 : i32, i32
  }
}

</mosaic_0001>

<bundles_post_ra>
// kernel: _forward.1
= control target key start
LH: loop header
LB: loop body
LE: loop exit
PB: predicated region body
PF: predicated region fallthrough
CT: control target
= control target key end

     0   :  { %12 = vsyncpa [#allocation3], 0  ;;  %s1896_s0 = inlined_call_operand.hbm [shape: f32[8,512], index: 0, kind: input, shape index: {}]   ;;  %s1897_s1 = inlined_call_operand.hbm [shape: bf16[512,256], index: 1, kind: input, shape index: {}]   ;;  %s1898_s2 = inlined_call_operand.hbm [shape: f32[1,256], index: 2, kind: input, shape index: {}]   ;;  %s1899_s3 = inlined_call_operand.hbm [shape: bf16[256,256], index: 3, kind: input, shape index: {}]   ;;  %s1900_s4 = inlined_call_operand.hbm [shape: f32[1,256], index: 4, kind: input, shape index: {}]   ;;  %s1901_s5 = inlined_call_operand.hbm [shape: bf16[256,128], index: 5, kind: input, shape index: {}]   ;;  %s1902_s6 = inlined_call_operand.vmem [shape: f32[1,128], index: 6, kind: input, shape index: {}]   ;;  %s1903_s7 = inlined_call_operand.hbm [shape: bf16[8,128], index: 7, kind: output, shape index: {}]  }
   0x1   :  { %13 = vsyncpa [#allocation6], 0 }
   0x2   :  { %14 = vsyncpa [#allocation9], 0 }
   0x3   :  { %15 = vsyncpa [#allocation12], 0  ;;  %s32_s26 = sshll.u32 %s1897_s1, 4  ;;  %s33_s26 = int_to_ptr.hbm [resolvable:$true] %s32_s26 }
   0x4   :  { %16 = vsyncpa [#allocation4], 0  ;;  %s1805_s27 = smov [#allocation5]   ;;  %s56_s8 = sshll.u32 %s1899_s3, 4  ;;  %s57_s8 = int_to_ptr.hbm [resolvable:$true] %s56_s8 }
   0x5   :  { %s34_s28 = sshll.u32 %s1805_s27, 4  ;;  %s1806_s9 = smov 128   ;;  %s35_s28 = int_to_ptr.vmem [resolvable:$true] %s34_s28 }
   0x6   :  { %s1807_s10 = smov 8   ;;  %s1808_s11 = smov [#allocation8]  }
   0x7   :  { %40 = dma.hbm_to_vmem [thread:$0]  %s33_s26, 8192, %s35_s28, [#allocation6], %s1806_s9, %s1806_s9, %s1807_s10  }
   0x8   :  { %s58_s12 = sshll.u32 %s1808_s11, 4  ;;  %s22_s15 = sshll.u32 %s1896_s0, 4  ;;  %s59_s12 = int_to_ptr.vmem [resolvable:$true] %s58_s12  ;;  %s23_s15 = int_to_ptr.hbm [resolvable:$true] %s22_s15 }
   0x9   :  { %64 = dma.hbm_to_vmem [thread:$0]  %s57_s8, 4096, %s59_s12, [#allocation9], %s1806_s9, %s1806_s9, %s1807_s10  }
   0xa   :  { %s46_s17 = sshll.u32 %s1898_s2, 4  ;;  %s1809_s18 = smov [#allocation2]   ;;  %s47_s17 = int_to_ptr.hbm [resolvable:$true] %s46_s17 }
   0xb   :  { %s24_s19 = sshll.u32 %s1809_s18, 4  ;;  %s1810_s3 = smov [#allocation7]   ;;  %s25_s19 = int_to_ptr.vmem [resolvable:$true] %s24_s19 }
   0xc   :  { %27 = dma.hbm_to_vmem [thread:$0]  %s23_s15, 512, %s25_s19, [#allocation3]  }
   0xd   :  { %s48_s20 = sshll.u32 %s1810_s3, 4  ;;  %s70_s23 = sshll.u32 %s1900_s4, 4  ;;  %s49_s20 = int_to_ptr.vmem [resolvable:$true] %s48_s20  ;;  %s71_s23 = int_to_ptr.hbm [resolvable:$true] %s70_s23 }
   0xe   :  { %51 = dma.hbm_to_vmem [thread:$0]  %s47_s17, 32, %s49_s20, [#allocation6]  }
   0xf   :  { %s80_s25 = sshll.u32 %s1901_s5, 4  ;;  %s1811_s26 = smov [#allocation10]   ;;  %s81_s25 = int_to_ptr.hbm [resolvable:$true] %s80_s25 }
  0x10   :  { %s72_s2 = sshll.u32 %s1811_s26, 4  ;;  %s1812_s27 = smov [#allocation11]   ;;  %s73_s2 = int_to_ptr.vmem [resolvable:$true] %s72_s2 }
  0x11   :  { %75 = dma.hbm_to_vmem [thread:$0]  %s71_s23, 32, %s73_s2, [#allocation9]  }
  0x12   :  { %s82_s28 = sshll.u32 %s1812_s27, 4  ;;  %s1813_s29 = smov 64   ;;  %s83_s28 = int_to_ptr.vmem [resolvable:$true] %s82_s28 }
  0x13   :  { %s1814_s30 = smov 4  }
  0x14   :  { %88 = dma.hbm_to_vmem [thread:$0]  %s81_s25, 2048, %s83_s28, [#allocation12], %s1813_s29, %s1813_s29, %s1814_s30  }
  0x15   :  { %1795 = dma.done.wait [#allocation3], 512  }
  0x16   :  { %1796 = vsyncadd [#allocation3], 4294966784 }
  0x17   :  { %1797 = dma.done.wait [#allocation6], 8224  }
  0x18   :  { %1798 = vsyncadd [#allocation6], 4294959072 }
  0x19   :  { %1799 = dma.done.wait [#allocation9], 4128  }
  0x1a   :  { %1800 = vsyncadd [#allocation9], 4294963168 }
  0x1b   :  { %1801 = dma.done.wait [#allocation12], 2048  }
  0x1c   :  { %1802 = vsyncadd [#allocation12], 4294965248  ;;  %v1113_v0 = vld [vmem:[#allocation5 + $0x70] sm:$0xf]  ;;  %v1518_v1 = vld [vmem:[#allocation5 + $0x74] sm:$0xf0] }
  0x1d   :  { %v1177_v2 = vld [vmem:[#allocation5 + $0xf0] sm:$0xf]  ;;  %v1114_v3 = vor.u32 %v1518_v1, %v1113_v0  ;;  %v1534_v4 = vld [vmem:[#allocation5 + $0xf4] sm:$0xf0]  ;;  %v1105_v11 = vld [vmem:[#allocation5 + $0x60] sm:$0xf] }
  0x1e   :  { %v1241_v5 = vld [vmem:[#allocation5 + $0x170] sm:$0xf]  ;;  %v1550_v6 = vld [vmem:[#allocation5 + $0x174] sm:$0xf0]  ;;  %v1178_v7 = vor.u32 %v1534_v4, %v1177_v2  ;;  %v1516_v13 = vld [vmem:[#allocation5 + $0x64] sm:$0xf0] }
  0x1f   :  { %v1242_v8 = vor.u32 %v1550_v6, %v1241_v5  ;;  %v1305_v9 = vld [vmem:[#allocation5 + $0x1f0] sm:$0xf]  ;;  %v1566_v10 = vld [vmem:[#allocation5 + $0x1f4] sm:$0xf0]  ;;  %513 = vmatpush.bf16.msra.mxu0 %v1114_v3  ;;  %v1169_v14 = vld [vmem:[#allocation5 + $0xe0] sm:$0xf]  ;;  %v1106_v16 = vor.u32 %v1516_v13, %v1105_v11 }
  0x20   :  { %v1306_v12 = vor.u32 %v1566_v10, %v1305_v9  ;;  %v1532_v15 = vld [vmem:[#allocation5 + $0xe4] sm:$0xf0]  ;;  %526 = vmatpush.bf16.msra.mxu1 %v1178_v7  ;;  %v1233_v18 = vld [vmem:[#allocation5 + $0x160] sm:$0xf]  ;;  %v1097_v23 = vld [vmem:[#allocation5 + $0x50] sm:$0xf] }
  0x21   :  { %539 = vmatpush.bf16.msra.mxu2 %v1242_v8  ;;  %v1170_v17 = vor.u32 %v1532_v15, %v1169_v14  ;;  %v1548_v19 = vld [vmem:[#allocation5 + $0x164] sm:$0xf0]  ;;  %v1297_v20 = vld [vmem:[#allocation5 + $0x1e0] sm:$0xf]  ;;  %v1514_v24 = vld [vmem:[#allocation5 + $0x54] sm:$0xf0] }
  0x22   :  { %552 = vmatpush.bf16.msra.mxu3 %v1306_v12  ;;  %v1234_v21 = vor.u32 %v1548_v19, %v1233_v18  ;;  %v1564_v22 = vld [vmem:[#allocation5 + $0x1e4] sm:$0xf0]  ;;  %v1161_v26 = vld [vmem:[#allocation5 + $0xd0] sm:$0xf]  ;;  %v1530_v27 = vld [vmem:[#allocation5 + $0xd4] sm:$0xf0]  ;;  %v1098_v29 = vor.u32 %v1514_v24, %v1097_v23 }
  0x23   :  { %v1298_v25 = vor.u32 %v1564_v22, %v1297_v20  ;;  %v1225_v28 = vld [vmem:[#allocation5 + $0x150] sm:$0xf]  ;;  %514 = vmatpush.bf16.msra.mxu0 %v1106_v16  ;;  %v1546_v30 = vld [vmem:[#allocation5 + $0x154] sm:$0xf0]  ;;  %v1162_v33 = vor.u32 %v1530_v27, %v1161_v26  ;;  %v1089_v35 = vld [vmem:[#allocation5 + $0x40] sm:$0xf] }
  0x24   :  { %v1289_v31 = vld [vmem:[#allocation5 + $0x1d0] sm:$0xf]  ;;  %v1562_v32 = vld [vmem:[#allocation5 + $0x1d4] sm:$0xf0]  ;;  %527 = vmatpush.bf16.msra.mxu1 %v1170_v17  ;;  %v1226_v34 = vor.u32 %v1546_v30, %v1225_v28  ;;  %v1512_v36 = vld [vmem:[#allocation5 + $0x44] sm:$0xf0] }
  0x25   :  { %540 = vmatpush.bf16.msra.mxu2 %v1234_v21  ;;  %v1153_v37 = vld [vmem:[#allocation5 + $0xc0] sm:$0xf]  ;;  %v1290_v38 = vor.u32 %v1562_v32, %v1289_v31  ;;  %v1528_v39 = vld [vmem:[#allocation5 + $0xc4] sm:$0xf0]  ;;  %v1090_v44 = vor.u32 %v1512_v36, %v1089_v35  ;;  %v1081_v47 = vld [vmem:[#allocation5 + $0x30] sm:$0xf] }
  0x26   :  { %553 = vmatpush.bf16.msra.mxu3 %v1298_v25  ;;  %v1217_v40 = vld [vmem:[#allocation5 + $0x140] sm:$0xf]  ;;  %v1544_v41 = vld [vmem:[#allocation5 + $0x144] sm:$0xf0]  ;;  %v1154_v45 = vor.u32 %v1528_v39, %v1153_v37  ;;  %v1510_v48 = vld [vmem:[#allocation5 + $0x34] sm:$0xf0] }
  0x27   :  { %v1281_v42 = vld [vmem:[#allocation5 + $0x1c0] sm:$0xf]  ;;  %v1560_v43 = vld [vmem:[#allocation5 + $0x1c4] sm:$0xf0]  ;;  %515 = vmatpush.bf16.msra.mxu0 %v1098_v29  ;;  %v1218_v46 = vor.u32 %v1544_v41, %v1217_v40  ;;  %v1145_v49 = vld [vmem:[#allocation5 + $0xb0] sm:$0xf]  ;;  %v1082_v56 = vor.u32 %v1510_v48, %v1081_v47 }
  0x28   :  { %528 = vmatpush.bf16.msra.mxu1 %v1162_v33  ;;  %v1282_v50 = vor.u32 %v1560_v43, %v1281_v42  ;;  %v1526_v51 = vld [vmem:[#allocation5 + $0xb4] sm:$0xf0]  ;;  %v1209_v52 = vld [vmem:[#allocation5 + $0x130] sm:$0xf]  ;;  %v1073_v59 = vld [vmem:[#allocation5 + $0x20] sm:$0xf] }
  0x29   :  { %541 = vmatpush.bf16.msra.mxu2 %v1226_v34  ;;  %v1542_v53 = vld [vmem:[#allocation5 + $0x134] sm:$0xf0]  ;;  %v1273_v54 = vld [vmem:[#allocation5 + $0x1b0] sm:$0xf]  ;;  %v1146_v57 = vor.u32 %v1526_v51, %v1145_v49  ;;  %v1508_v60 = vld [vmem:[#allocation5 + $0x24] sm:$0xf0] }
  0x2a   :  { %554 = vmatpush.bf16.msra.mxu3 %v1290_v38  ;;  %v1558_v55 = vld [vmem:[#allocation5 + $0x1b4] sm:$0xf0]  ;;  %v1210_v58 = vor.u32 %v1542_v53, %v1209_v52  ;;  %v1137_v61 = vld [vmem:[#allocation5 + $0xa0] sm:$0xf]  ;;  %v1524_v63 = vld [vmem:[#allocation5 + $0xa4] sm:$0xf0]  ;;  %v1074_v4 = vor.u32 %v1508_v60, %v1073_v59 }
  0x2b   :  { %516 = vmatpush.bf16.msra.mxu0 %v1090_v44  ;;  %v1274_v62 = vor.u32 %v1558_v55, %v1273_v54  ;;  %v1201_v0 = vld [vmem:[#allocation5 + $0x120] sm:$0xf]  ;;  %v1540_v1 = vld [vmem:[#allocation5 + $0x124] sm:$0xf0]  ;;  %v1138_v5 = vor.u32 %v1524_v63, %v1137_v61  ;;  %v1065_v7 = vld [vmem:[#allocation5 + $0x10] sm:$0xf] }
  0x2c   :  { %529 = vmatpush.bf16.msra.mxu1 %v1154_v45  ;;  %v1265_v2 = vld [vmem:[#allocation5 + $0x1a0] sm:$0xf]  ;;  %v1556_v3 = vld [vmem:[#allocation5 + $0x1a4] sm:$0xf0]  ;;  %v1202_v6 = vor.u32 %v1540_v1, %v1201_v0  ;;  %v1506_v8 = vld [vmem:[#allocation5 + $0x14] sm:$0xf0] }
  0x2d   :  { %542 = vmatpush.bf16.msra.mxu2 %v1218_v46  ;;  %v1129_v9 = vld [vmem:[#allocation5 + $0x90] sm:$0xf]  ;;  %v1266_v10 = vor.u32 %v1556_v3, %v1265_v2  ;;  %v1522_v11 = vld [vmem:[#allocation5 + $0x94] sm:$0xf0]  ;;  %v1066_v16 = vor.u32 %v1506_v8, %v1065_v7  ;;  %v1057_v17 = vld [vmem:[#allocation5] sm:$0xf] }
  0x2e   :  { %555 = vmatpush.bf16.msra.mxu3 %v1282_v50  ;;  %v1193_v12 = vld [vmem:[#allocation5 + $0x110] sm:$0xf]  ;;  %v1538_v13 = vld [vmem:[#allocation5 + $0x114] sm:$0xf0]  ;;  %v1504_v18 = vld [vmem:[#allocation5 + $0x4] sm:$0xf0]  ;;  %v1130_v19 = vor.u32 %v1522_v11, %v1129_v9 }
  0x2f   :  { %517 = vmatpush.bf16.msra.mxu0 %v1082_v56  ;;  %v1257_v14 = vld [vmem:[#allocation5 + $0x190] sm:$0xf]  ;;  %v1554_v15 = vld [vmem:[#allocation5 + $0x194] sm:$0xf0]  ;;  %v1194_v20 = vor.u32 %v1538_v13, %v1193_v12  ;;  %v1121_v21 = vld [vmem:[#allocation5 + $0x80] sm:$0xf]  ;;  %v1058_v31 = vor.u32 %v1504_v18, %v1057_v17 }
  0x30   :  { %530 = vmatpush.bf16.msra.mxu1 %v1146_v57  ;;  %v1520_v22 = vld [vmem:[#allocation5 + $0x84] sm:$0xf0]  ;;  %v1185_v23 = vld [vmem:[#allocation5 + $0x100] sm:$0xf]  ;;  %v1258_v24 = vor.u32 %v1554_v15, %v1257_v14  ;;  %v1517_v28 = vld [vmem:[#allocation5 + $0x74] sm:$0xf] }
  0x31   :  { %543 = vmatpush.bf16.msra.mxu2 %v1210_v58  ;;  %v1536_v25 = vld [vmem:[#allocation5 + $0x104] sm:$0xf0]  ;;  %v1249_v26 = vld [vmem:[#allocation5 + $0x180] sm:$0xf]  ;;  %v1115_v29 = vld [vmem:[#allocation5 + $0x78] sm:$0xf0]  ;;  %v1122_v35 = vor.u32 %v1520_v22, %v1121_v21 }
  0x32   :  { %556 = vmatpush.bf16.msra.mxu3 %v1274_v62  ;;  %v1552_v27 = vld [vmem:[#allocation5 + $0x184] sm:$0xf0]  ;;  %v1533_v30 = vld [vmem:[#allocation5 + $0xf4] sm:$0xf]  ;;  %v1179_v32 = vld [vmem:[#allocation5 + $0xf8] sm:$0xf0]  ;;  %v1186_v36 = vor.u32 %v1536_v25, %v1185_v23  ;;  %v1118_v41 = vor.u32 %v1517_v28, %v1115_v29 }
  0x33   :  { %518 = vmatpush.bf16.msra.mxu0 %v1074_v4  ;;  %v1549_v33 = vld [vmem:[#allocation5 + $0x174] sm:$0xf]  ;;  %v1243_v34 = vld [vmem:[#allocation5 + $0x178] sm:$0xf0]  ;;  %v1250_v40 = vor.u32 %v1552_v27, %v1249_v26  ;;  %v1515_v42 = vld [vmem:[#allocation5 + $0x64] sm:$0xf]  ;;  %v1182_v45 = vor.u32 %v1533_v30, %v1179_v32 }
  0x34   :  { %531 = vmatpush.bf16.msra.mxu1 %v1138_v5  ;;  %v1565_v37 = vld [vmem:[#allocation5 + $0x1f4] sm:$0xf]  ;;  %v1307_v38 = vld [vmem:[#allocation5 + $0x1f8] sm:$0xf0]  ;;  %v1107_v43 = vld [vmem:[#allocation5 + $0x68] sm:$0xf0]  ;;  %v1246_v46 = vor.u32 %v1549_v33, %v1243_v34 }
  0x35   :  { %544 = vmatpush.bf16.msra.mxu2 %v1202_v6  ;;  %v117_v39 = vld [vmem:[#allocation2 + $0x10] sm:$0xff]  ;;  %v115_v44 = vld [vmem:[#allocation2] sm:$0xff]  ;;  %v118_v48 = vld [vmem:[#allocation2 + $0x18] sm:$0xff]  ;;  %v1310_v50 = vor.u32 %v1565_v37, %v1307_v38  ;;  %v1110_v59 = vor.u32 %v1515_v42, %v1107_v43  ;;  %s1815_s8 = smov [#allocation13]   ;;  %s1042_s12 = sshll.u32 %s1903_s7, 4  ;;  %s1043_s12 = int_to_ptr.hbm [resolvable:$true] %s1042_s12 }
  0x36   :  { %557 = vmatpush.bf16.msra.mxu3 %v1266_v10  ;;  %v1531_v47 = vld [vmem:[#allocation5 + $0xe4] sm:$0xf]  ;;  %v116_v49 = vld [vmem:[#allocation2 + $0x8] sm:$0xff]  ;;  %v1874_v54 = vpack.c.bf16 %v117_v39, %v117_v39  ;;  %v1876_v57 = vpack.c.bf16 %v115_v44, %v115_v44  ;;  %v1878_v58 = vpack.c.bf16 %v118_v48, %v118_v48  ;;  %v1513_v63 = vld [vmem:[#allocation5 + $0x54] sm:$0xf]  ;;  %s1040_s9 = sshll.u32 %s1815_s8, 4  ;;  %s1041_s9 = int_to_ptr.vmem [resolvable:$true] %s1040_s9 }
  0x37   :  { %519 = vmatpush.bf16.msra.mxu0 %v1066_v16  ;;  %v1171_v51 = vld [vmem:[#allocation5 + $0xe8] sm:$0xf0]  ;;  %v1547_v52 = vld [vmem:[#allocation5 + $0x164] sm:$0xf]  ;;  %v1880_v60 = vpack.c.bf16 %v116_v49, %v116_v49  ;;  %v1099_v0 = vld [vmem:[#allocation5 + $0x58] sm:$0xf0] }
  0x38   :  { %532 = vmatpush.bf16.msra.mxu1 %v1130_v19  ;;  %v1235_v53 = vld [vmem:[#allocation5 + $0x168] sm:$0xf0]  ;;  %v1563_v55 = vld [vmem:[#allocation5 + $0x1e4] sm:$0xf]  ;;  %v1174_v61 = vor.u32 %v1531_v47, %v1171_v51  ;;  %v1529_v1 = vld [vmem:[#allocation5 + $0xd4] sm:$0xf]  ;;  %v1102_v8 = vor.u32 %v1513_v63, %v1099_v0 }
  0x39   :  { %545 = vmatpush.bf16.msra.mxu2 %v1194_v20  ;;  %v1299_v56 = vld [vmem:[#allocation5 + $0x1e8] sm:$0xf0]  ;;  %v1238_v62 = vor.u32 %v1547_v52, %v1235_v53  ;;  %v1163_v3 = vld [vmem:[#allocation5 + $0xd8] sm:$0xf0]  ;;  %v1545_v4 = vld [vmem:[#allocation5 + $0x154] sm:$0xf] }
  0x3a   :  { %558 = vmatpush.bf16.msra.mxu3 %v1258_v24  ;;  %v1302_v2 = vor.u32 %v1563_v55, %v1299_v56  ;;  %v1227_v5 = vld [vmem:[#allocation5 + $0x158] sm:$0xf0]  ;;  %v1561_v6 = vld [vmem:[#allocation5 + $0x1d4] sm:$0xf]  ;;  %v1166_v9 = vor.u32 %v1529_v1, %v1163_v3  ;;  %v1511_v11 = vld [vmem:[#allocation5 + $0x44] sm:$0xf] }
  0x3b   :  { %520 = vmatpush.bf16.msra.mxu0 %v1058_v31  ;;  %v1291_v7 = vld [vmem:[#allocation5 + $0x1d8] sm:$0xf0]  ;;  %v1230_v10 = vor.u32 %v1545_v4, %v1227_v5  ;;  %v1091_v12 = vld [vmem:[#allocation5 + $0x48] sm:$0xf0]  ;;  %v1527_v13 = vld [vmem:[#allocation5 + $0xc4] sm:$0xf] }
  0x3c   :  { %533 = vmatpush.bf16.msra.mxu1 %v1122_v35  ;;  %v1294_v14 = vor.u32 %v1561_v6, %v1291_v7  ;;  %v1155_v15 = vld [vmem:[#allocation5 + $0xc8] sm:$0xf0]  ;;  %v1543_v16 = vld [vmem:[#allocation5 + $0x144] sm:$0xf]  ;;  %v1094_v20 = vor.u32 %v1511_v11, %v1091_v12  ;;  %v1509_v23 = vld [vmem:[#allocation5 + $0x34] sm:$0xf] }
  0x3d   :  { %546 = vmatpush.bf16.msra.mxu2 %v1186_v36  ;;  %v1219_v17 = vld [vmem:[#allocation5 + $0x148] sm:$0xf0]  ;;  %v1559_v18 = vld [vmem:[#allocation5 + $0x1c4] sm:$0xf]  ;;  %v1158_v21 = vor.u32 %v1527_v13, %v1155_v15  ;;  %v1083_v24 = vld [vmem:[#allocation5 + $0x38] sm:$0xf0] }
  0x3e   :  { %559 = vmatpush.bf16.msra.mxu3 %v1250_v40  ;;  %521 = vmatmul.bf16.vlgmr.msra.gmra.mxu0 %v1876_v57  ;;  %v1283_v19 = vld [vmem:[#allocation5 + $0x1c8] sm:$0xf0]  ;;  %v1222_v22 = vor.u32 %v1543_v16, %v1219_v17  ;;  %v1525_v25 = vld [vmem:[#allocation5 + $0xb4] sm:$0xf]  ;;  %v1147_v27 = vld [vmem:[#allocation5 + $0xb8] sm:$0xf0]  ;;  %v1086_v32 = vor.u32 %v1509_v23, %v1083_v24 }
  0x3f   :  { %565 = vmatpush.bf16.msrb.mxu0 %v1118_v41  ;;  %534 = vmatmul.bf16.vlgmr.msra.gmra.mxu1 %v1880_v60  ;;  %v1286_v26 = vor.u32 %v1559_v18, %v1283_v19  ;;  %v1541_v28 = vld [vmem:[#allocation5 + $0x134] sm:$0xf]  ;;  %v1211_v29 = vld [vmem:[#allocation5 + $0x138] sm:$0xf0]  ;;  %v1150_v33 = vor.u32 %v1525_v25, %v1147_v27  ;;  %v1507_v35 = vld [vmem:[#allocation5 + $0x24] sm:$0xf] }
  0x40   :  { %578 = vmatpush.bf16.msrb.mxu1 %v1182_v45  ;;  %547 = vmatmul.bf16.vlgmr.msra.gmra.mxu2 %v1874_v54  ;;  %v1557_v30 = vld [vmem:[#allocation5 + $0x1b4] sm:$0xf]  ;;  %v1275_v31 = vld [vmem:[#allocation5 + $0x1b8] sm:$0xf0]  ;;  %v1214_v34 = vor.u32 %v1541_v28, %v1211_v29  ;;  %v1075_v36 = vld [vmem:[#allocation5 + $0x28] sm:$0xf0] }
  0x41   :  { %591 = vmatpush.bf16.msrb.mxu2 %v1246_v46  ;;  %560 = vmatmul.bf16.vlgmr.msra.gmra.mxu3 %v1878_v58  ;;  %v1523_v37 = vld [vmem:[#allocation5 + $0xa4] sm:$0xf]  ;;  %v1278_v38 = vor.u32 %v1557_v30, %v1275_v31  ;;  %v1139_v39 = vld [vmem:[#allocation5 + $0xa8] sm:$0xf0]  ;;  %v1078_v44 = vor.u32 %v1507_v35, %v1075_v36  ;;  %v1505_v45 = vld [vmem:[#allocation5 + $0x14] sm:$0xf] }
  0x42   :  { %604 = vmatpush.bf16.msrb.mxu3 %v1310_v50  ;;  %v1539_v40 = vld [vmem:[#allocation5 + $0x124] sm:$0xf]  ;;  %v1203_v41 = vld [vmem:[#allocation5 + $0x128] sm:$0xf0]  ;;  %v1142_v46 = vor.u32 %v1523_v37, %v1139_v39  ;;  %v1067_v48 = vld [vmem:[#allocation5 + $0x18] sm:$0xf0] }
  0x43   :  { %566 = vmatpush.bf16.msrb.mxu0 %v1110_v59  ;;  %v1555_v42 = vld [vmem:[#allocation5 + $0x1a4] sm:$0xf]  ;;  %v1267_v43 = vld [vmem:[#allocation5 + $0x1a8] sm:$0xf0]  ;;  %v1206_v47 = vor.u32 %v1539_v40, %v1203_v41  ;;  %v1521_v49 = vld [vmem:[#allocation5 + $0x94] sm:$0xf]  ;;  %v1070_v59 = vor.u32 %v1505_v45, %v1067_v48 }
  0x44   :  { %579 = vmatpush.bf16.msrb.mxu1 %v1174_v61  ;;  %v1131_v50 = vld [vmem:[#allocation5 + $0x98] sm:$0xf0]  ;;  %v1270_v51 = vor.u32 %v1555_v42, %v1267_v43  ;;  %v1537_v52 = vld [vmem:[#allocation5 + $0x114] sm:$0xf]  ;;  %v1503_v61 = vld [vmem:[#allocation5 + $0x4] sm:$0xf] }
  0x45   :  { %592 = vmatpush.bf16.msrb.mxu2 %v1238_v62  ;;  %v1195_v53 = vld [vmem:[#allocation5 + $0x118] sm:$0xf0]  ;;  %v1553_v55 = vld [vmem:[#allocation5 + $0x194] sm:$0xf]  ;;  %v1134_v62 = vor.u32 %v1521_v49, %v1131_v50  ;;  %v1059_v0 = vld [vmem:[#allocation5 + $0x8] sm:$0xf0] }
  0x46   :  { %605 = vmatpush.bf16.msrb.mxu3 %v1302_v2  ;;  %v1259_v56 = vld [vmem:[#allocation5 + $0x198] sm:$0xf0]  ;;  %v1198_v63 = vor.u32 %v1537_v52, %v1195_v53  ;;  %v1519_v1 = vld [vmem:[#allocation5 + $0x84] sm:$0xf]  ;;  %v1123_v2 = vld [vmem:[#allocation5 + $0x88] sm:$0xf0] }
  0x47   :  { %567 = vmatpush.bf16.msrb.mxu0 %v1102_v8  ;;  %v1262_v3 = vor.u32 %v1553_v55, %v1259_v56  ;;  %v1535_v4 = vld [vmem:[#allocation5 + $0x104] sm:$0xf]  ;;  %v1187_v5 = vld [vmem:[#allocation5 + $0x108] sm:$0xf0]  ;;  %v1369_v8 = vld [vmem:[#allocation8 + $0x70] sm:$0xf]  ;;  %v1126_v13 = vor.u32 %v1519_v1, %v1123_v2 }
  0x48   :  { %580 = vmatpush.bf16.msrb.mxu1 %v1166_v9  ;;  %v1551_v6 = vld [vmem:[#allocation5 + $0x184] sm:$0xf]  ;;  %v1251_v7 = vld [vmem:[#allocation5 + $0x188] sm:$0xf0]  ;;  %v1582_v9 = vld [vmem:[#allocation8 + $0x74] sm:$0xf0] }
  0x49   :  { %593 = vmatpush.bf16.msrb.mxu2 %v1230_v10  ;;  %v1062_v10 = vor.u32 %v1503_v61, %v1059_v0  ;;  %v1581_v11 = vld [vmem:[#allocation8 + $0x74] sm:$0xf]  ;;  %v1371_v12 = vld [vmem:[#allocation8 + $0x78] sm:$0xf0]  ;;  %v1254_v15 = vor.u32 %v1551_v6, %v1251_v7  ;;  %v1370_v16 = vor.u32 %v1582_v9, %v1369_v8  ;;  %v1361_v18 = vld [vmem:[#allocation8 + $0x60] sm:$0xf] }
  0x4a   :  { %606 = vmatpush.bf16.msrb.mxu3 %v1294_v14  ;;  %v1190_v14 = vor.u32 %v1535_v4, %v1187_v5  ;;  %v1374_v17 = vor.u32 %v1581_v11, %v1371_v12  ;;  %v1580_v19 = vld [vmem:[#allocation8 + $0x64] sm:$0xf0]  ;;  %v1353_v24 = vld [vmem:[#allocation8 + $0x50] sm:$0xf]  ;;  %v1578_v25 = vld [vmem:[#allocation8 + $0x54] sm:$0xf0] }
  0x4b   :  { %568 = vmatpush.bf16.msrb.mxu0 %v1094_v20  ;;  %v1579_v20 = vld [vmem:[#allocation8 + $0x64] sm:$0xf]  ;;  %v1355_v27 = vld [vmem:[#allocation8 + $0x58] sm:$0xf0]  ;;  %v1354_v28 = vor.u32 %v1578_v25, %v1353_v24  ;;  %v1345_v30 = vld [vmem:[#allocation8 + $0x40] sm:$0xf] }
  0x4c   :  { %581 = vmatpush.bf16.msrb.mxu1 %v1158_v21  ;;  %v1363_v21 = vld [vmem:[#allocation8 + $0x68] sm:$0xf0]  ;;  %v1576_v31 = vld [vmem:[#allocation8 + $0x44] sm:$0xf0]  ;;  %v1337_v35 = vld [vmem:[#allocation8 + $0x30] sm:$0xf] }
  0x4d   :  { %594 = vmatpush.bf16.msrb.mxu2 %v1222_v22  ;;  %v1362_v22 = vor.u32 %v1580_v19, %v1361_v18  ;;  %v1366_v23 = vor.u32 %v1579_v20, %v1363_v21  ;;  %v1573_v36 = vld [vmem:[#allocation8 + $0x34] sm:$0xf]  ;;  %v1572_v39 = vld [vmem:[#allocation8 + $0x24] sm:$0xf0]  ;;  %v1571_v40 = vld [vmem:[#allocation8 + $0x24] sm:$0xf] }
  0x4e   :  { %607 = vmatpush.bf16.msrb.mxu3 %v1286_v26  ;;  %v1577_v26 = vld [vmem:[#allocation8 + $0x54] sm:$0xf]  ;;  %v1331_v42 = vld [vmem:[#allocation8 + $0x28] sm:$0xf0]  ;;  %v1570_v45 = vld [vmem:[#allocation8 + $0x14] sm:$0xf0] }
  0x4f   :  { %569 = vmatpush.bf16.msrb.mxu0 %v1086_v32  ;;  %v1358_v29 = vor.u32 %v1577_v26, %v1355_v27  ;;  %v1575_v32 = vld [vmem:[#allocation8 + $0x44] sm:$0xf]  ;;  %v1334_v43 = vor.u32 %v1571_v40, %v1331_v42  ;;  %v1598_v48 = vld [vmem:[#allocation8 + $0xf4] sm:$0xf0]  ;;  %v1569_v49 = vld [vmem:[#allocation8 + $0x14] sm:$0xf] }
  0x50   :  { %582 = vmatpush.bf16.msrb.mxu1 %v1150_v33  ;;  %v1346_v33 = vor.u32 %v1576_v31, %v1345_v30  ;;  %v1323_v50 = vld [vmem:[#allocation8 + $0x18] sm:$0xf0]  ;;  %v1597_v53 = vld [vmem:[#allocation8 + $0xf4] sm:$0xf]  ;;  %v1313_v56 = vld [vmem:[#allocation8] sm:$0xf] }
  0x51   :  { %595 = vmatpush.bf16.msrb.mxu2 %v1214_v34  ;;  %v1326_v52 = vor.u32 %v1569_v49, %v1323_v50  ;;  %v1435_v55 = vld [vmem:[#allocation8 + $0xf8] sm:$0xf0]  ;;  %v1568_v61 = vld [vmem:[#allocation8 + $0x4] sm:$0xf0]  ;;  %v1567_v2 = vld [vmem:[#allocation8 + $0x4] sm:$0xf] }
  0x52   :  { %608 = vmatpush.bf16.msrb.mxu3 %v1278_v38  ;;  %v1329_v38 = vld [vmem:[#allocation8 + $0x20] sm:$0xf]  ;;  %v1314_v0 = vor.u32 %v1568_v61, %v1313_v56  ;;  %v1595_v4 = vld [vmem:[#allocation8 + $0xe4] sm:$0xf]  ;;  %v1427_v6 = vld [vmem:[#allocation8 + $0xe8] sm:$0xf0] }
  0x53   :  { %570 = vmatpush.bf16.msrb.mxu0 %v1078_v44  ;;  %v1330_v41 = vor.u32 %v1572_v39, %v1329_v38  ;;  %v1321_v44 = vld [vmem:[#allocation8 + $0x10] sm:$0xf]  ;;  %v1594_v8 = vld [vmem:[#allocation8 + $0xd4] sm:$0xf0]  ;;  %v1430_v9 = vor.u32 %v1595_v4, %v1427_v6  ;;  %v1419_v11 = vld [vmem:[#allocation8 + $0xd8] sm:$0xf0] }
  0x54   :  { %583 = vmatpush.bf16.msrb.mxu1 %v1142_v46  ;;  %v1433_v46 = vld [vmem:[#allocation8 + $0xf0] sm:$0xf]  ;;  %v187_v20 = vld [vmem:[#allocation7] sm:$0x3]  ;;  %v1587_v30 = vld [vmem:[#allocation8 + $0xa4] sm:$0xf] }
  0x55   :  { %596 = vmatpush.bf16.msrb.mxu2 %v1206_v47  ;;  %v1322_v47 = vor.u32 %v1570_v45, %v1321_v44  ;;  %v1417_v7 = vld [vmem:[#allocation8 + $0xd0] sm:$0xf]  ;;  %v1403_v25 = vld [vmem:[#allocation8 + $0xb8] sm:$0xf0]  ;;  %v189_v26 = vperm.slane %v187_v20, 0 }
  0x56   :  { %609 = vmatpush.bf16.msrb.mxu3 %v1270_v51  ;;  %v1434_v51 = vor.u32 %v1598_v48, %v1433_v46  ;;  %v1418_v12 = vor.u32 %v1594_v8, %v1417_v7  ;;  %v1401_v21 = vld [vmem:[#allocation8 + $0xb0] sm:$0xf]  ;;  %v1387_v38 = vld [vmem:[#allocation8 + $0x98] sm:$0xf0]  ;;  %v1584_v44 = vld [vmem:[#allocation8 + $0x84] sm:$0xf0] }
  0x57   :  { %571 = vmatpush.bf16.msrb.mxu0 %v1070_v59  ;;  %v1438_v59 = vor.u32 %v1597_v53, %v1435_v55  ;;  %v1583_v45 = vld [vmem:[#allocation8 + $0x84] sm:$0xf]  ;;  %v1379_v49 = vld [vmem:[#allocation8 + $0x88] sm:$0xf0] }
  0x58   :  { %584 = vmatpush.bf16.msrb.mxu1 %v1134_v62  ;;  %v1425_v62 = vld [vmem:[#allocation8 + $0xe0] sm:$0xf] }
  0x59   :  { %597 = vmatpush.bf16.msrb.mxu2 %v1198_v63  ;;  %v1596_v63 = vld [vmem:[#allocation8 + $0xe4] sm:$0xf0] }
  0x5a   :  { %610 = vmatpush.bf16.msrb.mxu3 %v1262_v3  ;;  %v1426_v1 = vor.u32 %v1596_v63, %v1425_v62  ;;  %v1315_v3 = vld [vmem:[#allocation8 + $0x8] sm:$0xf0] }
  0x5b   :  { %572 = vmatpush.bf16.msrb.mxu0 %v1062_v10  ;;  %v1318_v5 = vor.u32 %v1567_v2, %v1315_v3  ;;  %v1593_v10 = vld [vmem:[#allocation8 + $0xd4] sm:$0xf] }
  0x5c   :  { %585 = vmatpush.bf16.msrb.mxu1 %v1126_v13  ;;  %v1422_v13 = vor.u32 %v1593_v10, %v1419_v11  ;;  %v1606_v11 = vld [vmem:[#allocation11 + $0x38] sm:$0xff] }
  0x5d   :  { %598 = vmatpush.bf16.msrb.mxu2 %v1190_v14  ;;  %v1409_v14 = vld [vmem:[#allocation8 + $0xc0] sm:$0xf] }
  0x5e   :  { %611 = vmatpush.bf16.msrb.mxu3 %v1254_v15  ;;  %573 = vmatmul.bf16.vlgmr.msrb.gmra.mxu0 %v1876_v57  ;;  %v1347_v57 = vld [vmem:[#allocation8 + $0x48] sm:$0xf0]  ;;  %v1592_v15 = vld [vmem:[#allocation8 + $0xc4] sm:$0xf0] }
  0x5f   :  { %819 = vmatpush.bf16.msra.mxu0 %v1370_v16  ;;  %586 = vmatmul.bf16.vlgmr.msrb.gmra.mxu1 %v1880_v60  ;;  %v1350_v34 = vor.u32 %v1575_v32, %v1347_v57  ;;  %v1574_v60 = vld [vmem:[#allocation8 + $0x34] sm:$0xf0]  ;;  %v1591_v16 = vld [vmem:[#allocation8 + $0xc4] sm:$0xf]  ;;  %v1410_v18 = vor.u32 %v1592_v15, %v1409_v14  ;;  %v1395_v57 = vld [vmem:[#allocation8 + $0xa8] sm:$0xf0] }
  0x60   :  { %599 = vmatmul.bf16.vlgmr.msrb.gmra.mxu2 %v1874_v54  ;;  %v1339_v54 = vld [vmem:[#allocation8 + $0x38] sm:$0xf0]  ;;  %v1338_v37 = vor.u32 %v1574_v60, %v1337_v35  ;;  %832 = vmatpush.bf16.msra.mxu1 %v1434_v51  ;;  %v1398_v35 = vor.u32 %v1587_v30, %v1395_v57  ;;  %v1382_v51 = vor.u32 %v1583_v45, %v1379_v49  ;;  %v1604_v14 = vld [vmem:[#allocation11 + $0x28] sm:$0xff]  ;;  %v1613_v15 = vld [vmem:[#allocation11 + $0x70] sm:$0xff] }
  0x61   :  { %845 = vmatpush.bf16.msra.mxu2 %v1374_v17  ;;  %612 = vmatmul.bf16.vlgmr.msrb.gmra.mxu3 %v1878_v58  ;;  %v1342_v58 = vor.u32 %v1573_v36, %v1339_v54  ;;  %v1411_v17 = vld [vmem:[#allocation8 + $0xc8] sm:$0xf0]  ;;  %v1385_v36 = vld [vmem:[#allocation8 + $0x90] sm:$0xf]  ;;  %v1586_v54 = vld [vmem:[#allocation8 + $0x94] sm:$0xf0] }
  0x62   :  { %858 = vmatpush.bf16.msra.mxu3 %v1438_v59  ;;  %v1414_v19 = vor.u32 %v1591_v16, %v1411_v17  ;;  %v190_v59 = vperm.slane %v187_v20, 1  ;;  %v1603_v16 = vld [vmem:[#allocation11 + $0x20] sm:$0xff]  ;;  %v1612_v17 = vld [vmem:[#allocation11 + $0x68] sm:$0xff]  ;;  %v1601_v20 = vld [vmem:[#allocation11 + $0x10] sm:$0xff] }
  0x63   :  { %820 = vmatpush.bf16.msra.mxu0 %v1362_v22  ;;  %v1590_v22 = vld [vmem:[#allocation8 + $0xb4] sm:$0xf0] }
  0x64   :  { %833 = vmatpush.bf16.msra.mxu1 %v1426_v1  ;;  %v1402_v24 = vor.u32 %v1590_v22, %v1401_v21  ;;  %v1610_v21 = vld [vmem:[#allocation11 + $0x58] sm:$0xff]  ;;  %v1600_v22 = vld [vmem:[#allocation11 + $0x8] sm:$0xff] }
  0x65   :  { %846 = vmatpush.bf16.msra.mxu2 %v1366_v23  ;;  %v1589_v23 = vld [vmem:[#allocation8 + $0xb4] sm:$0xf] }
  0x66   :  { %859 = vmatpush.bf16.msra.mxu3 %v1430_v9  ;;  %v1406_v27 = vor.u32 %v1589_v23, %v1403_v25  ;;  %v1609_v23 = vld [vmem:[#allocation11 + $0x50] sm:$0xff]  ;;  %v1599_v25 = vld [vmem:[#allocation11] sm:$0xff] }
  0x67   :  { %821 = vmatpush.bf16.msra.mxu0 %v1354_v28  ;;  %v1393_v28 = vld [vmem:[#allocation8 + $0xa0] sm:$0xf] }
  0x68   :  { %834 = vmatpush.bf16.msra.mxu1 %v1418_v12  ;;  %v1605_v12 = vld [vmem:[#allocation11 + $0x30] sm:$0xff] }
  0x69   :  { %847 = vmatpush.bf16.msra.mxu2 %v1358_v29  ;;  %v1588_v29 = vld [vmem:[#allocation8 + $0xa4] sm:$0xf0] }
  0x6a   :  { %860 = vmatpush.bf16.msra.mxu3 %v1422_v13  ;;  %v1394_v32 = vor.u32 %v1588_v29, %v1393_v28  ;;  %v1614_v13 = vld [vmem:[#allocation11 + $0x78] sm:$0xff]  ;;  %v1607_v28 = vld [vmem:[#allocation11 + $0x40] sm:$0xff] }
  0x6b   :  { %822 = vmatpush.bf16.msra.mxu0 %v1346_v33 }
  0x6c   :  { %835 = vmatpush.bf16.msra.mxu1 %v1410_v18  ;;  %v1602_v18 = vld [vmem:[#allocation11 + $0x18] sm:$0xff] }
  0x6d   :  { %848 = vmatpush.bf16.msra.mxu2 %v1350_v34 }
  0x6e   :  { %861 = vmatpush.bf16.msra.mxu3 %v1414_v19  ;;  %v1611_v19 = vld [vmem:[#allocation11 + $0x60] sm:$0xff] }
  0x6f   :  { %823 = vmatpush.bf16.msra.mxu0 %v1338_v37  ;;  %v1585_v37 = vld [vmem:[#allocation8 + $0x94] sm:$0xf] }
  0x70   :  { %836 = vmatpush.bf16.msra.mxu1 %v1402_v24  ;;  %v1390_v40 = vor.u32 %v1585_v37, %v1387_v38 }
  0x71   :  { %849 = vmatpush.bf16.msra.mxu2 %v1342_v58  ;;  %v1386_v58 = vor.u32 %v1586_v54, %v1385_v36 }
  0x72   :  { %862 = vmatpush.bf16.msra.mxu3 %v1406_v27 }
  0x73   :  { %824 = vmatpush.bf16.msra.mxu0 %v1330_v41 }
  0x74   :  { %837 = vmatpush.bf16.msra.mxu1 %v1394_v32 }
  0x75   :  { %850 = vmatpush.bf16.msra.mxu2 %v1334_v43  ;;  %v1377_v43 = vld [vmem:[#allocation8 + $0x80] sm:$0xf] }
  0x76   :  { %863 = vmatpush.bf16.msra.mxu3 %v1398_v35  ;;  %v1378_v48 = vor.u32 %v1584_v44, %v1377_v43  ;;  %v1626_v43 = vld [vmem:[%s1902_s6] ss:$0 sm:$0xff] }
  0x77   :  { %825 = vmatpush.bf16.msra.mxu0 %v1322_v47 }
  0x78   :  { %838 = vmatpush.bf16.msra.mxu1 %v1386_v58 }
  0x79   :  { %851 = vmatpush.bf16.msra.mxu2 %v1326_v52 }
  0x7a   :  { %864 = vmatpush.bf16.msra.mxu3 %v1390_v40 }
  0x7b   :  { %826 = vmatpush.bf16.msra.mxu0 %v1314_v0 }
  0x7c   :  { %839 = vmatpush.bf16.msra.mxu1 %v1378_v48 }
  0x7d   :  { %852 = vmatpush.bf16.msra.mxu2 %v1318_v5 }
  0x7e   :  { %865 = vmatpush.bf16.msra.mxu3 %v1382_v51 }
  0x7f   :  { %1007 = vmatpush.bf16.msrb.mxu0 %v1606_v11 }
  0x80   :  { %1020 = vmatpush.bf16.msrb.mxu1 %v1614_v13 }
  0x83   :  { %1008 = vmatpush.bf16.msrb.mxu0 %v1605_v12 }
  0x84   :  { %1021 = vmatpush.bf16.msrb.mxu1 %v1613_v15 }
  0x87   :  { %1009 = vmatpush.bf16.msrb.mxu0 %v1604_v14 }
  0x88   :  { %1022 = vmatpush.bf16.msrb.mxu1 %v1612_v17 }
  0x8b   :  { %1010 = vmatpush.bf16.msrb.mxu0 %v1603_v16 }
  0x8c   :  { %1023 = vmatpush.bf16.msrb.mxu1 %v1611_v19 }
  0x8f   :  { %1011 = vmatpush.bf16.msrb.mxu0 %v1602_v18 }
  0x90   :  { %1024 = vmatpush.bf16.msrb.mxu1 %v1610_v21 }
  0x93   :  { %1012 = vmatpush.bf16.msrb.mxu0 %v1601_v20 }
  0x94   :  { %1025 = vmatpush.bf16.msrb.mxu1 %v1609_v23 }
  0x97   :  { %1013 = vmatpush.bf16.msrb.mxu0 %v1600_v22 }
  0x9b   :  { %1014 = vmatpush.bf16.msrb.mxu0 %v1599_v25 }
  0xbb   :  { %v522_v31 = vpop.f32.mrf.mxu0 }
  0xbc   :  { %v523_v33 = vadd.f32 %v522_v31, %v189_v26  ;;  %v535_v34 = vpop.f32.mrf.mxu1  ;;  %v1608_v26 = vld [vmem:[#allocation11 + $0x48] sm:$0xff]  ;;  %v653_v31 = vld [vmem:[#allocation10] sm:$0x3] }
  0xbd   :  { %1026 = vmatpush.bf16.msrb.mxu1 %v1608_v26  ;;  %v655_v32 = vperm.slane %v653_v31, 0 }
  0xbe   :  { %v536_v60 = vadd.f32 %v535_v34, %v523_v33  ;;  %v656_v34 = vperm.slane %v653_v31, 1 }
  0xc1   :  { %1027 = vmatpush.bf16.msrb.mxu1 %v1607_v28 }
  0xc3   :  { %v548_v39 = vpop.f32.mrf.mxu2  ;;  %v524_v47 = vpop.f32.mrf.mxu0 }
  0xc4   :  { %v549_v41 = vadd.f32 %v548_v39, %v536_v60  ;;  %v561_v42 = vpop.f32.mrf.mxu3  ;;  %v537_v50 = vpop.f32.mrf.mxu1 }
  0xc6   :  { %v562_v46 = vadd.f32 %v561_v42, %v549_v41 }
  0xc8   :  { %v617_v52 = vmax.f32 %v562_v46, 0.0 }
  0xca   :  { %v619_v53 = vpack.c.bf16 %v617_v52, %v617_v52 }
  0xcb   :  { %v550_v55 = vpop.f32.mrf.mxu2 }
  0xcc   :  { %827 = vmatmul.bf16.vlgmr.msra.gmra.mxu0 %v619_v53  ;;  %853 = vmatmul.bf16.vlgmr.msra.gmra.mxu2 %v619_v53  ;;  %v563_v56 = vpop.f32.mrf.mxu3 }
  0xdb   :  { %v574_v61 = vpop.f32.mrf.mxu0 }
  0xdc   :  { %v575_v62 = vadd.f32 %v574_v61, %v190_v59  ;;  %v587_v63 = vpop.f32.mrf.mxu1 }
  0xde   :  { %v588_v0 = vadd.f32 %v587_v63, %v575_v62 }
  0xe3   :  { %v600_v1 = vpop.f32.mrf.mxu2  ;;  %v576_v4 = vpop.f32.mrf.mxu0 }
  0xe4   :  { %v601_v2 = vadd.f32 %v600_v1, %v588_v0  ;;  %v613_v3 = vpop.f32.mrf.mxu3  ;;  %v589_v5 = vpop.f32.mrf.mxu1 }
  0xe6   :  { %v614_v6 = vadd.f32 %v613_v3, %v601_v2 }
  0xe8   :  { %v618_v7 = vmax.f32 %v614_v6, 0.0 }
  0xea   :  { %v620_v8 = vpack.c.bf16 %v618_v7, %v618_v7 }
  0xeb   :  { %v602_v9 = vpop.f32.mrf.mxu2 }
  0xec   :  { %v615_v10 = vpop.f32.mrf.mxu3  ;;  %840 = vmatmul.bf16.vlgmr.msra.gmra.mxu1 %v620_v8  ;;  %866 = vmatmul.bf16.vlgmr.msra.gmra.mxu3 %v620_v8 }
 0x149   :  { %v828_v24 = vpop.f32.mrf.mxu0 }
 0x14a   :  { %v829_v57 = vadd.f32 %v828_v24, %v655_v32 }
 0x14f   :  { %v854_v27 = vpop.f32.mrf.mxu2 }
 0x150   :  { %v855_v36 = vadd.f32 %v854_v27, %v656_v34 }
 0x151   :  { %v830_v29 = vpop.f32.mrf.mxu0 }
 0x157   :  { %v856_v30 = vpop.f32.mrf.mxu2 }
 0x169   :  { %v841_v33 = vpop.f32.mrf.mxu1 }
 0x16a   :  { %v842_v35 = vadd.f32 %v841_v33, %v829_v57 }
 0x16c   :  { %v871_v60 = vmax.f32 %v842_v35, 0.0 }
 0x16e   :  { %v873_v54 = vpack.c.bf16 %v871_v60, %v871_v60 }
 0x16f   :  { %v867_v37 = vpop.f32.mrf.mxu3 }
 0x170   :  { %v868_v58 = vadd.f32 %v867_v37, %v855_v36  ;;  %1015 = vmatmul.bf16.vlgmr.msrb.gmra.mxu0 %v873_v54 }
 0x171   :  { %v843_v38 = vpop.f32.mrf.mxu1 }
 0x172   :  { %v872_v39 = vmax.f32 %v868_v58, 0.0 }
 0x174   :  { %v874_v40 = vpack.c.bf16 %v872_v39, %v872_v39 }
 0x176   :  { %1028 = vmatmul.bf16.vlgmr.msrb.gmra.mxu1 %v874_v40 }
 0x177   :  { %v869_v41 = vpop.f32.mrf.mxu3 }
 0x1ed   :  { %v1016_v42 = vpop.f32.mrf.mxu0 }
 0x1ee   :  { %v1017_v44 = vadd.f32 %v1626_v43, %v1016_v42 }
 0x1f3   :  { %v1029_v45 = vpop.f32.mrf.mxu1 }
 0x1f4   :  { %v1030_v46 = vadd.f32 %v1029_v45, %v1017_v44 }
 0x1f5   :  { %v1018_v47 = vpop.f32.mrf.mxu0 }
 0x1f6   :  { %v1033_v48 = vpack.c.bf16 %v1030_v46, %v1030_v46 }
 0x1f8   :  { %1034 = vst [vmem:[#allocation13] sm:$0xf] %v1033_v48 }
 0x1f9   :  { %1045 = dma.vmem_to_hbm [thread:$0]  %s1041_s9, 64, %s1043_s12, [#allocation4]  }
 0x1fb   :  { %v1031_v49 = vpop.f32.mrf.mxu1 }
 0x1fc   :  { %1803 = dma.done.wait [#allocation4], 64  }
 0x1fd   :  { %1804 = vsyncadd [#allocation4], 4294967232 }
 0x1fe   :  { %1050 = vsyncpa [#allocation3], 1 }
 0x1ff   :  { %1051 = vsyncpa [#allocation6], 1 }
 0x200   :  { %1052 = vsyncpa [#allocation9], 1 }
 0x201   :  { %1053 = vsyncpa [#allocation12], 1 }
 0x202   :  { %1054 = vsyncpa [#allocation4], 1 }

</bundles_post_ra>
